<compile_context>
chip_gen: v7x
topology: tpu7x:2x2x1
jax: 0.10.0
libtpu: 0.0.40
codegen_flags: <defaults>
</compile_context>

<pallas_src>
import functools

import jax
import jax.numpy as jnp
from jax.experimental import pallas as pl
from jax.experimental.pallas import tpu as pltpu


_LANE = 128
_SUBLANE = 8
# ~2 MiB of f32 per input block -> 2 inputs x 2 buffers = 8 MiB, plus a few MiB
# of in-kernel f32 temporaries; comfortably inside the 32 MiB scoped-VMEM limit
# requested below on every generation (v5e / v6e / v7x).
_DEFAULT_BLOCK_BYTES = 2 * 1024 * 1024


def _accum_rows(out_ref, bce, rows):
    """Accumulate the first `rows` (static) rows of `bce` into the (1, 8, L) out block."""
    lane = bce.shape[1]
    full = (rows // _SUBLANE) * _SUBLANE
    if full > 0:
        folded = bce[:full].reshape(full // _SUBLANE, _SUBLANE, lane)
        out_ref[0] += jnp.sum(folded, axis=0)           # VALU vreg adds, lane-dense store
    left = rows - full
    if left > 0:                                        # cold path: < 8 leftover rows
        out_ref[0, :left] += bce[full:rows]


def _bce_sum_kernel(p_ref, t_ref, out_ref, *, num_tiles, tile_rows, rem_rows):
    """Streaming BCE-with-logits partial-sum over one (1, tile_rows, L) block."""
    tile = pl.program_id(1)

    @pl.when(tile == 0)
    def _():
        out_ref[...] = jnp.zeros_like(out_ref)

    x = p_ref[0].astype(jnp.float32)                    # (tile_rows, L) logits
    z = t_ref[0].astype(jnp.float32)                    # (tile_rows, L) targets
    # Numerically stable BCEWithLogitsLoss(reduction='none'):
    #   max(x, 0) - x*z + log(1 + exp(-|x|))
    bce = jnp.maximum(x, 0.0) - x * z + jnp.log(1.0 + jnp.exp(-jnp.abs(x)))

    if rem_rows == tile_rows:
        # Every grid step covers exactly tile_rows valid rows: no masks, no branches.
        _accum_rows(out_ref, bce, tile_rows)
    else:
        # Only the (statically known) last tile is partial; every other tile
        # takes the unmasked fast path.
        @pl.when(tile < num_tiles - 1)
        def _():
            _accum_rows(out_ref, bce, tile_rows)

        @pl.when(tile == num_tiles - 1)
        def _():
            _accum_rows(out_ref, bce, rem_rows)


def celoss4mots(predict, target, num_classes=3, ignore_index=None,
                block_bytes=_DEFAULT_BLOCK_BYTES):
    """predict, target: (N, C, D, H, W); same semantics as the PyTorch forward."""
    assert predict.shape == target.shape, "predict & target shape do not match"
    N, C, D, H, W = predict.shape
    assert C == num_classes
    S = D * H * W
    NC = N * C

    # ---- free (no pad / no copy) factorization S = R * L for a lane layout ----
    if S % _LANE == 0:
        R, L = S // _LANE, _LANE                        # fully lane-dense view
    else:
        R, L = D * H, W                                 # last dim -> lanes; still zero-copy

    p = predict.reshape(NC, R, L)                       # contiguous merges only: free
    t = target.reshape(NC, R, L)

    # ---- tile rows so one f32-equivalent block is ~block_bytes ----
    lanes_padded = -(-L // _LANE) * _LANE
    max_rows = max(_SUBLANE,
                   (block_bytes // (lanes_padded * 4)) // _SUBLANE * _SUBLANE)
    if R <= max_rows:
        tile_rows, num_tiles = R, 1                     # single tile (may be < 8 rows)
    else:
        tile_rows = max_rows                            # multiple of 8
        num_tiles = -(-R // tile_rows)
    rem_rows = R - (num_tiles - 1) * tile_rows          # rows in the (possibly partial) last tile

    kernel = functools.partial(_bce_sum_kernel, num_tiles=num_tiles,
                               tile_rows=tile_rows, rem_rows=rem_rows)

    part = pl.pallas_call(
        kernel,
        out_shape=jax.ShapeDtypeStruct((NC, _SUBLANE, L), jnp.float32),
        grid_spec=pltpu.PrefetchScalarGridSpec(
            num_scalar_prefetch=0,
            grid=(NC, num_tiles),
            in_specs=[
                pl.BlockSpec((1, tile_rows, L), lambda r, s: (r, s, 0)),
                pl.BlockSpec((1, tile_rows, L), lambda r, s: (r, s, 0)),
            ],
            out_specs=pl.BlockSpec((1, _SUBLANE, L), lambda r, s: (r, 0, 0)),
        ),
        compiler_params=pltpu.CompilerParams(
            dimension_semantics=("parallel", "arbitrary"),
            vmem_limit_bytes=32 * 1024 * 1024,
        ),
    )(p, t)

    # ---- tiny per-(n, c) bookkeeping in plain JAX (N*C scalars) ----
    per_sample = jnp.sum(part, axis=(1, 2)).reshape(N, C) / jnp.float32(S)
    valid = target[:, :, 0, 0, 0] != -1                          # (N, C)
    num = jnp.sum(jnp.where(valid, per_sample, 0.0), axis=0)     # (C,)
    cnt = jnp.sum(valid, axis=0).astype(jnp.float32)             # (C,)
    per_class = num / cnt          # 0 valid samples -> 0/0 -> NaN, exactly like PyTorch

    keep = [i for i in range(num_classes) if i != ignore_index]
    vals = per_class[jnp.asarray(keep, dtype=jnp.int32)]
    not_nan = ~jnp.isnan(vals)
    n_valid = jnp.sum(not_nan).astype(jnp.float32)
    total = jnp.sum(jnp.where(not_nan, vals, 0.0))
    return total / n_valid         # NaN iff every kept class had zero valid samples (PyTorch parity)


def _reference(predict, target, num_classes=3, ignore_index=None):
    """Pure-JAX reimplementation of the PyTorch forward, for verification."""
    losses = []
    for i in range(num_classes):
        if i == ignore_index:
            continue
        x = predict[:, i].astype(jnp.float32)
        z = target[:, i].astype(jnp.float32)
        bce = jnp.maximum(x, 0.0) - x * z + jnp.log(1.0 + jnp.exp(-jnp.abs(x)))
        ce = jnp.mean(bce, axis=(1, 2, 3))
        flag = target[:, i, 0, 0, 0] != -1
        avg = jnp.sum(jnp.where(flag, ce, 0.0)) / jnp.sum(flag)
        losses.append(avg)
    vals = jnp.stack(losses)
    m = ~jnp.isnan(vals)
    return jnp.sum(jnp.where(m, vals, 0.0)) / jnp.sum(m)


# TODO(synk): weight_function from the PyTorch class is unused by forward()
# and is intentionally not implemented.

if __name__ == "__main__":
    key = jax.random.PRNGKey(0)
    k1, k2, k3, k4 = jax.random.split(key, 4)

    loss_fn = jax.jit(celoss4mots,
                      static_argnames=("num_classes", "ignore_index", "block_bytes"))

    # Config 1: lane-dense path (S % 128 == 0), single tile per (n, c),
    # one invalid (sample, class) volume marked with the -1 sentinel.
    N, C, D, H, W = 2, 3, 4, 16, 24
    predict = jax.random.normal(k1, (N, C, D, H, W), dtype=jnp.float32)
    target = (jax.random.uniform(k2, (N, C, D, H, W)) > 0.5).astype(jnp.float32)
    target = target.at[1, 2].set(-1.0)

    loss1 = jax.block_until_ready(loss_fn(predict, target, num_classes=C))
    ref1 = _reference(predict, target, num_classes=C)
    assert jnp.allclose(loss1, ref1, rtol=1e-5, atol=1e-6), (loss1, ref1)

    # Config 2: fallback layout (W -> lanes, S % 128 != 0), multi-tile grid with a
    # partial last tile, and one class with zero valid samples (NaN-filter path).
    N2, C2, D2, H2, W2 = 1, 3, 3, 6, 20
    predict2 = jax.random.normal(k3, (N2, C2, D2, H2, W2), dtype=jnp.float32)
    target2 = (jax.random.uniform(k4, (N2, C2, D2, H2, W2)) > 0.5).astype(jnp.float32)
    target2 = target2.at[0, 1].set(-1.0)

    loss2 = jax.block_until_ready(
        loss_fn(predict2, target2, num_classes=C2, block_bytes=8 * 128 * 4))
    ref2 = _reference(predict2, target2, num_classes=C2)
    assert jnp.allclose(loss2, ref2, rtol=1e-5, atol=1e-6), (loss2, ref2)

    print("KERNEL_OK")
</pallas_src>

<mosaic_0001>
module attributes {stable_mosaic.version = 11 : i64} {
  func.func @_bce_sum_kernel(%arg0: i32, %arg1: i32, %arg2: memref<1x12x128xf32, #tpu.memory_space<vmem>>, %arg3: memref<1x12x128xf32, #tpu.memory_space<vmem>>, %arg4: memref<1x8x128xf32, #tpu.memory_space<vmem>>) attributes {dimension_semantics = [#tpu.dimension_semantics<parallel>, #tpu.dimension_semantics<arbitrary>], iteration_bounds = array<i64: 6, 1>, scalar_prefetch = 0 : i64, scratch_operands = 0 : i64, tpu.core_type = #tpu.core_type<tc>, window_params = [{transform_indices = @transform_0, window_bounds = array<i64: 1, 12, 128>}, {transform_indices = @transform_1, window_bounds = array<i64: 1, 12, 128>}, {transform_indices = @transform_2, window_bounds = array<i64: 1, 8, 128>}]} {
    %c0_i32 = arith.constant 0 : i32
    %0 = arith.cmpi eq, %arg1, %c0_i32 : i32
    %1 = arith.extui %0 : i1 to i32
    %c0_i32_0 = arith.constant 0 : i32
    %2 = arith.cmpi ne, %1, %c0_i32_0 : i32
    scf.if %2 {
      %cst_21 = arith.constant 0.000000e+00 : f32
      %35 = vector.broadcast %cst_21 : f32 to vector<1x8x128xf32>
      %c0_22 = arith.constant 0 : index
      %c0_23 = arith.constant 0 : index
      %c0_24 = arith.constant 0 : index
      %36 = vector.load %arg4[%c0_22, %c0_23, %c0_24] : memref<1x8x128xf32, #tpu.memory_space<vmem>>, vector<1x8x128xf32>
      tpu.vector_store %arg4[%c0_22, %c0_23, %c0_24], %35 {strides = array<i32>} : memref<1x8x128xf32, #tpu.memory_space<vmem>>, vector<1x8x128xf32>,
    } else {
    }
    %c0 = arith.constant 0 : index
    %c0_1 = arith.constant 0 : index
    %c0_2 = arith.constant 0 : index
    %3 = vector.load %arg2[%c0, %c0_1, %c0_2] : memref<1x12x128xf32, #tpu.memory_space<vmem>>, vector<1x12x128xf32>
    %4 = vector.shape_cast %3 : vector<1x12x128xf32> to vector<12x128xf32>
    %c0_3 = arith.constant 0 : index
    %c0_4 = arith.constant 0 : index
    %c0_5 = arith.constant 0 : index
    %5 = vector.load %arg3[%c0_3, %c0_4, %c0_5] : memref<1x12x128xf32, #tpu.memory_space<vmem>>, vector<1x12x128xf32>
    %6 = vector.shape_cast %5 : vector<1x12x128xf32> to vector<12x128xf32>
    %cst = arith.constant 0.000000e+00 : f32
    %7 = vector.broadcast %cst : f32 to vector<12x128xf32>
    %8 = arith.maximumf %4, %7 : vector<12x128xf32>
    %9 = arith.mulf %4, %6 : vector<12x128xf32>
    %10 = arith.subf %8, %9 : vector<12x128xf32>
    %11 = math.absf %4 : vector<12x128xf32>
    %cst_6 = arith.constant 0.000000e+00 : f32
    %12 = vector.broadcast %cst_6 : f32 to vector<12x128xf32>
    %13 = arith.subf %12, %11 : vector<12x128xf32>
    %14 = math.exp %13 : vector<12x128xf32>
    %cst_7 = arith.constant 1.000000e+00 : f32
    %15 = vector.broadcast %cst_7 : f32 to vector<12x128xf32>
    %16 = arith.addf %15, %14 : vector<12x128xf32>
    %17 = math.log %16 : vector<12x128xf32>
    %18 = arith.addf %10, %17 : vector<12x128xf32>
    %19 = vector.extract_strided_slice %18 {offsets = [0, 0], sizes = [8, 128], strides = [1, 1]} : vector<12x128xf32> to vector<8x128xf32>
    %20 = vector.shape_cast %19 : vector<8x128xf32> to vector<1x8x128xf32>
    %c0_8 = arith.constant 0 : index
    %c0_9 = arith.constant 0 : index
    %c0_10 = arith.constant 0 : index
    %21 = vector.load %arg4[%c0_8, %c0_9, %c0_10] : memref<1x8x128xf32, #tpu.memory_space<vmem>>, vector<1x8x128xf32>
    %22 = vector.shape_cast %21 : vector<1x8x128xf32> to vector<8x128xf32>
    %cst_11 = arith.constant dense<0.000000e+00> : vector<8x128xf32>
    %23 = vector.multi_reduction <add>, %20, %cst_11 [0] : vector<1x8x128xf32> to vector<8x128xf32>
    %24 = arith.addf %22, %23 : vector<8x128xf32>
    %c0_12 = arith.constant 0 : index
    %c0_13 = arith.constant 0 : index
    %c0_14 = arith.constant 0 : index
    %25 = vector.load %arg4[%c0_12, %c0_13, %c0_14] : memref<1x8x128xf32, #tpu.memory_space<vmem>>, vector<1x8x128xf32>
    %26 = vector.shape_cast %25 : vector<1x8x128xf32> to vector<8x128xf32>
    %27 = vector.shape_cast %24 : vector<8x128xf32> to vector<1x8x128xf32>
    tpu.vector_store %arg4[%c0_12, %c0_13, %c0_14], %27 {strides = array<i32>} : memref<1x8x128xf32, #tpu.memory_space<vmem>>, vector<1x8x128xf32>,
    %c0_15 = arith.constant 0 : index
    %c0_16 = arith.constant 0 : index
    %c0_17 = arith.constant 0 : index
    %28 = vector.load %arg4[%c0_15, %c0_16, %c0_17] : memref<1x8x128xf32, #tpu.memory_space<vmem>>, vector<1x4x128xf32>
    %29 = vector.shape_cast %28 : vector<1x4x128xf32> to vector<4x128xf32>
    %30 = vector.extract_strided_slice %18 {offsets = [8, 0], sizes = [4, 128], strides = [1, 1]} : vector<12x128xf32> to vector<4x128xf32>
    %31 = arith.addf %29, %30 : vector<4x128xf32>
    %c0_18 = arith.constant 0 : index
    %c0_19 = arith.constant 0 : index
    %c0_20 = arith.constant 0 : index
    %32 = vector.load %arg4[%c0_18, %c0_19, %c0_20] : memref<1x8x128xf32, #tpu.memory_space<vmem>>, vector<1x4x128xf32>
    %33 = vector.shape_cast %32 : vector<1x4x128xf32> to vector<4x128xf32>
    %34 = vector.shape_cast %31 : vector<4x128xf32> to vector<1x4x128xf32>
    tpu.vector_store %arg4[%c0_18, %c0_19, %c0_20], %34 {strides = array<i32>} : memref<1x8x128xf32, #tpu.memory_space<vmem>>, vector<1x4x128xf32>,
    return
  }
  func.func @transform_0(%arg0: i32, %arg1: i32) -> (i32, i32, i32) {
    %c0_i32 = arith.constant 0 : i32
    %c0_i32_0 = arith.constant 0 : i32
    return %arg0, %arg1, %c0_i32 : i32, i32, i32
  }
  func.func @transform_1(%arg0: i32, %arg1: i32) -> (i32, i32, i32) {
    %c0_i32 = arith.constant 0 : i32
    %c0_i32_0 = arith.constant 0 : i32
    return %arg0, %arg1, %c0_i32 : i32, i32, i32
  }
  func.func @transform_2(%arg0: i32, %arg1: i32) -> (i32, i32, i32) {
    %c0_i32 = arith.constant 0 : i32
    %c0_i32_0 = arith.constant 0 : i32
    %c0_i32_1 = arith.constant 0 : i32
    return %arg0, %c0_i32, %c0_i32_0 : i32, i32, i32
  }
}

</mosaic_0001>

<bundles_post_ra>
// kernel: celoss4mots.1
= control target key start
LH: loop header
LB: loop body
LE: loop exit
PB: predicated region body
PF: predicated region fallthrough
CT: control target
= control target key end

     0   :  { %s415_s9 = smov 0   ;;  %s417_s10 = smov 0   ;;  %s455_s0 = inlined_call_operand.vmem [shape: f32[6,12,128], index: 0, kind: input, shape index: {}]   ;;  %s456_s1 = inlined_call_operand.vmem [shape: f32[6,12,128], index: 1, kind: input, shape index: {}]   ;;  %s457_s2 = inlined_call_operand.vmem [shape: f32[6,8,128], index: 2, kind: output, shape index: {}]  }
   0x1   :  { %s419_s11 = smov 0  }
   0x2 LB: > { %s24_s12 = sadd.s32 1, %s394_s10  ;;  %p333_p0 = scmp.ge.s32.totalorder %s398_s11, 1  ;;  %s398_s11 = sphi %s419_s11, %s12_s11   ;;  %s394_s10 = sphi %s417_s10, %s459_s10   ;;  %s390_s9 = sphi %s415_s9, %s458_s9  }
   0x3   : > { %p26_p1 = scmp.ge.s32.totalorder %s24_s12, 6  ;;  %p148_p2 = scmp.lt.s32.totalorder %s398_s11, 7 }
   0x5   : > { %s461_s12 = smov (%p26_p1, %s24_s12), 0  ;;  %p149_p3 = pnand %p333_p0, %p148_p2 }
   0x6   : > { %p183_p4 = scmp.lt.s32.totalorder (!%p149_p3), %s390_s9, 5 }
   0x7   : > { %152 = sbr.rel (%p149_p3) target bundleno = 63 (0x3f), region = 28 }
   0xe   : > { %s463_s9 = smov (!%p183_p4, %s390_s9), 5 }
   0xf   : > { %s341_s13 = sshll.u32 %s463_s9, 4  ;;  %s338_s20 = sshll.u32 %s463_s9, 3 }
  0x10   : > { %s190_s16 = scalar_lea.vmem %s455_s0, %s341_s13  ;;  %s200_s19 = scalar_lea.vmem %s456_s1, %s341_s13 }
  0x11   : > { %v211_v0 = vld [vmem:[%s190_s16] sm:$0xff]  ;;  %v212_v1 = vld [vmem:[%s190_s16 + $0x8] sm:$0xf]  ;;  %s205_s23 = scalar_lea.vmem %s457_s2, %s338_s20 }
  0x12   : > { %v221_v2 = vand.u32 2147483647, %v211_v0  ;;  %v222_v3 = vand.u32 2147483647, %v212_v1  ;;  %v213_v12 = vld [vmem:[%s200_s19] sm:$0xff]  ;;  %v215_v13 = vmax.f32 %v211_v0, 0.0 }
  0x13   : > { %v217_v14 = vmul.f32 %v213_v12, %v211_v0  ;;  %v214_v17 = vld [vmem:[%s200_s19 + $0x8] sm:$0xf]  ;;  %v216_v20 = vmax.f32 %v212_v1, 0.0 }
  0x14   : > { %v223_v4 = vsub.f32 0.0, %v221_v2  ;;  %v224_v5 = vsub.f32 0.0, %v222_v3  ;;  %v218_v21 = vmul.f32 %v214_v17, %v212_v1 }
  0x15   : > { %v219_v15 = vsub.f32 %v215_v13, %v217_v14 }
  0x16   : > { %v225_v6 = vmul.f32 1.442695, %v223_v4  ;;  %v227_v7 = vmul.f32 1.442695, %v224_v5  ;;  %v220_v23 = vsub.f32 %v216_v20, %v218_v21 }
  0x18   : > { %368 = vpow2.f32 %v225_v6 }
  0x19   : > { %370 = vpow2.f32 %v227_v7 }
  0x22   : > { %v369_v8 = vpop.eup %368 }
  0x23   : > { %v371_v9 = vpop.eup %370  ;;  %v229_v10 = vadd.f32 1.0, %v369_v8 }
  0x24   : > { %v230_v11 = vadd.f32 1.0, %v371_v9 }
  0x25   : > { %372 = vlog2.f32 %v229_v10 }
  0x26   : > { %374 = vlog2.f32 %v230_v11 }
  0x2f   : > { %v373_v16 = vpop.eup %372 }
  0x30   : > { %v232_v18 = vmul.f32 0.6931472, %v373_v16  ;;  %v375_v22 = vpop.eup %374 }
  0x31   : > { %v234_v24 = vmul.f32 0.6931472, %v375_v22 }
  0x32   : > { %v235_v19 = vadd.f32 %v232_v18, %v219_v15 }
  0x33   : > { %v236_v25 = vadd.f32 %v234_v24, %v220_v23 }
  0x34   : > { %240 = vst [vmem:[%s205_s23] sm:$0xff] %v235_v19 }
  0x3b   : > { %v241_v26 = vld [vmem:[%s205_s23] sm:$0xf] }
  0x3c   : > { %v242_v27 = vadd.f32 %v241_v26, %v236_v25 }
  0x3e   : > { %243 = vst [vmem:[%s205_s23] sm:$0xf] %v242_v27 }
  0x3f PF: > { %s12_s11 = sadd.s32 1, %s398_s11   ;;  %s458_s9 = smov %s394_s10 }
  0x40   : > { %p9_p5 = scmp.ge.s32.totalorder %s12_s11, 8   ;;  %s459_s10 = smov %s461_s12 }
  0x42   :  { %11 = sbr.rel (!%p9_p5) target bundleno = 2 (0x2), region = 65 }

</bundles_post_ra>
